<compile_context>
chip_gen: v5e
topology: v5e:2x2
jax: 0.10.0
libtpu: 0.0.40
codegen_flags: <defaults>
</compile_context>

<pallas_src>
import functools

import jax
import jax.numpy as jnp
from jax.experimental import pallas as pl
from jax.experimental.pallas import tpu as pltpu


def _cdiv(a, b):
    return (a + b - 1) // b


def _round_up(a, b):
    return _cdiv(a, b) * b


def _round_down(a, b):
    return (a // b) * b


def _sublane_multiple(dtype):
    """Packed-sublane multiple: 8 for 4-byte, 16 for 2-byte, 32 for 1-byte."""
    itemsize = jnp.dtype(dtype).itemsize
    return max(8, 8 * (4 // max(1, itemsize)))


def _gap_single_kernel(x_ref, o_ref, *, inv_s):
    # x_ref: (Rt, S)  -- full spatial plane per row, single spatial step.
    # o_ref: (Rt, 1)
    x = x_ref[...].astype(jnp.float32)
    o_ref[...] = (jnp.sum(x, axis=-1, keepdims=True) * inv_s).astype(o_ref.dtype)


def _gap_multi_kernel(x_ref, o_ref, acc_ref, *, inv_s, s_total, st):
    # x_ref  : (Rt, St) input-dtype spatial tile (St % 128 == 0)
    # o_ref  : (Rt, 1)
    # acc_ref: (Rt, 128) f32 lane-wide running sum, persists across the
    #          innermost ("arbitrary") spatial grid axis.
    si = pl.program_id(1)
    ns = pl.num_programs(1)

    @pl.when(si == 0)
    def _init():
        acc_ref[...] = jnp.zeros_like(acc_ref)

    ragged = (s_total % st) != 0          # static (Python) condition
    n_slices = st // 128                  # static unroll count

    if ragged:
        # Hoisted out of the loop (JAX does not CSE broadcast_in_dim).
        lane = jax.lax.broadcasted_iota(jnp.int32, acc_ref.shape, 1)

    for j in range(n_slices):
        # Lane-aligned 128-wide slice; cast to f32 slice-by-slice so no full
        # (Rt, St) f32 temp is ever materialized.
        sl = x_ref[:, j * 128:(j + 1) * 128].astype(jnp.float32)
        if ragged:
            off = si * st + j * 128
            sl = jnp.where(off + lane < s_total, sl, 0.0)
        acc_ref[...] += sl

    @pl.when(si == ns - 1)
    def _finalize():
        total = jnp.sum(acc_ref[...], axis=-1, keepdims=True)   # one XLU reduce
        o_ref[...] = (total * inv_s).astype(o_ref.dtype)


def adaptive_avg_pool2d(x, *, block_bytes=4 << 20, max_spatial_block=4096,
                        spatial_block=None, vmem_limit_bytes=40 << 20):
    """Global average pool: (N, C, H, W) -> (N, C, 1, 1)."""
    N, C, H, W = x.shape
    R, S = N * C, H * W
    dtype = x.dtype
    itemsize = jnp.dtype(dtype).itemsize
    pack = _sublane_multiple(dtype)
    block_elems = max(block_bytes // itemsize, pack * 128)

    x_flat = x.reshape(R, S)              # free, contiguous reshape
    inv_s = 1.0 / float(S)

    # --- spatial tiling -----------------------------------------------------
    use_single = (spatial_block is None) and (S * pack <= block_elems)
    if use_single:
        St = S                             # block dim == full dim: always legal
        n_spatial = 1
    else:
        if spatial_block is not None:
            St = _round_up(spatial_block, 128)
        else:
            St = _round_up(min(S, max_spatial_block), 128)
        St = min(St, _round_up(S, 128))    # never wider than the padded plane
        n_spatial = _cdiv(S, St)

    # --- row tiling (fills the byte budget, packing-aligned) ----------------
    Rt = max(pack, _round_down(block_elems // max(St, 1), pack))
    if Rt >= R:
        Rt = R
        # v7x megacore: only "parallel" axes shard across the 2 TensorCores,
        # so make sure there are >= 2 row blocks whenever R allows it.
        if R >= 2 * pack:
            half = _round_up(_cdiv(R, 2), pack)
            if half < R:
                Rt = half
    n_rows = _cdiv(R, Rt)
    # NOTE: ragged row / spatial tails are handled in-kernel (spatial tail is
    # masked; row tail only produces out-of-bounds output rows which Pallas
    # drops on writeback) -- no host-side padding pass over the input.

    out_struct = jax.ShapeDtypeStruct((R, 1), dtype)
    cost = pl.CostEstimate(flops=R * S, transcendentals=0,
                           bytes_accessed=R * S * itemsize + R * itemsize)

    if use_single:
        kernel = functools.partial(_gap_single_kernel, inv_s=inv_s)
        out = pl.pallas_call(
            kernel,
            out_shape=out_struct,
            grid_spec=pltpu.PrefetchScalarGridSpec(
                num_scalar_prefetch=0,
                grid=(n_rows,),
                in_specs=[pl.BlockSpec((Rt, St), lambda r: (r, 0))],
                out_specs=pl.BlockSpec((Rt, 1), lambda r: (r, 0)),
            ),
            compiler_params=pltpu.CompilerParams(
                dimension_semantics=("parallel",),
                vmem_limit_bytes=vmem_limit_bytes),
            cost_estimate=cost,
        )(x_flat)
    else:
        kernel = functools.partial(_gap_multi_kernel, inv_s=inv_s,
                                   s_total=S, st=St)
        out = pl.pallas_call(
            kernel,
            out_shape=out_struct,
            grid_spec=pltpu.PrefetchScalarGridSpec(
                num_scalar_prefetch=0,
                grid=(n_rows, n_spatial),
                in_specs=[pl.BlockSpec((Rt, St), lambda r, s: (r, s))],
                out_specs=pl.BlockSpec((Rt, 1), lambda r, s: (r, 0)),
                scratch_shapes=[pltpu.VMEM((Rt, 128), jnp.float32)],
            ),
            compiler_params=pltpu.CompilerParams(
                dimension_semantics=("parallel", "arbitrary"),
                vmem_limit_bytes=vmem_limit_bytes),
            cost_estimate=cost,
        )(x_flat)

    return out.reshape(N, C, 1, 1)


def adaptive_avg_pool2d_reference(x):
    return jnp.mean(jnp.mean(x, axis=-2, keepdims=True), axis=-1,
                    keepdims=True)


if __name__ == "__main__":
    key = jax.random.PRNGKey(0)

    # Main shape from the module spec: (N, C, H, W) = (2, 4, 16, 16).
    N, C, H, W = 2, 4, 16, 16
    x = jax.random.normal(key, (N, C, H, W), jnp.float32)
    ref = adaptive_avg_pool2d_reference(x)

    # Default path: single spatial step (St == S), large row tiles, no pad.
    out = jax.block_until_ready(adaptive_avg_pool2d(x))
    assert out.shape == (N, C, 1, 1), out.shape
    assert jnp.allclose(out, ref, atol=1e-5, rtol=1e-5), \
        float(jnp.max(jnp.abs(out - ref)))

    # Multi-step spatial path with a ragged last tile: S = 10*13 = 130 and a
    # forced 128-lane spatial block -> 2 reduction steps, second tile masked
    # in-kernel (no host-side padding).
    x2 = jax.random.normal(jax.random.PRNGKey(1), (2, 4, 10, 13), jnp.float32)
    ref2 = adaptive_avg_pool2d_reference(x2)
    out2 = jax.block_until_ready(adaptive_avg_pool2d(x2, spatial_block=128))
    assert out2.shape == (2, 4, 1, 1), out2.shape
    assert jnp.allclose(out2, ref2, atol=1e-5, rtol=1e-5), \
        float(jnp.max(jnp.abs(out2 - ref2)))

    print("KERNEL_OK")
</pallas_src>

<mosaic_0001>
module attributes {stable_mosaic.version = 11 : i64} {
  func.func @_gap_single_kernel(%arg0: i32, %arg1: memref<8x256xf32, #tpu.memory_space<vmem>>, %arg2: memref<8x1xf32, #tpu.memory_space<vmem>>) attributes {dimension_semantics = [#tpu.dimension_semantics<parallel>], iteration_bounds = array<i64: 1>, scalar_prefetch = 0 : i64, scratch_operands = 0 : i64, tpu.core_type = #tpu.core_type<tc>, window_params = [{transform_indices = @transform_0, window_bounds = array<i64: 8, 256>}, {transform_indices = @transform_1, window_bounds = array<i64: 8, 1>}]} {
    %c0 = arith.constant 0 : index
    %c0_0 = arith.constant 0 : index
    %0 = vector.load %arg1[%c0, %c0_0] : memref<8x256xf32, #tpu.memory_space<vmem>>, vector<8x256xf32>
    %cst = arith.constant dense<0.000000e+00> : vector<8xf32>
    %1 = vector.multi_reduction <add>, %0, %cst [1] : vector<8x256xf32> to vector<8xf32>
    %2 = vector.shape_cast %1 : vector<8xf32> to vector<8x1xf32>
    %cst_1 = arith.constant 3.906250e-03 : f32
    %3 = vector.broadcast %cst_1 : f32 to vector<8x1xf32>
    %4 = arith.mulf %2, %3 : vector<8x1xf32>
    %c0_2 = arith.constant 0 : index
    %c0_3 = arith.constant 0 : index
    %5 = vector.load %arg2[%c0_2, %c0_3] : memref<8x1xf32, #tpu.memory_space<vmem>>, vector<8x1xf32>
    tpu.vector_store %arg2[%c0_2, %c0_3], %4 {strides = array<i32>} : memref<8x1xf32, #tpu.memory_space<vmem>>, vector<8x1xf32>,
    return
  }
  func.func @transform_0(%arg0: i32) -> (i32, i32) {
    %c0_i32 = arith.constant 0 : i32
    %c0_i32_0 = arith.constant 0 : i32
    return %arg0, %c0_i32 : i32, i32
  }
  func.func @transform_1(%arg0: i32) -> (i32, i32) {
    %c0_i32 = arith.constant 0 : i32
    %c0_i32_0 = arith.constant 0 : i32
    return %arg0, %c0_i32 : i32, i32
  }
}

</mosaic_0001>

<bundles_post_ra>
// kernel: tpu_custom_call.1
= control target key start
LH: loop header
LB: loop body
LE: loop exit
PB: predicated region body
PF: predicated region fallthrough
CT: control target
= control target key end

     0   :  { %6 = vsyncpa [#allocation3], 0  ;;  %s62_s9 = smov [#allocation2]   ;;  %s79_s0 = inlined_call_operand.hbm [shape: f32[8,256], index: 0, kind: input, shape index: {}]   ;;  %s80_s1 = inlined_call_operand.vmem [shape: f32[8,1], index: 1, kind: output, shape index: {}]  }
   0x1   :  { %s12_s8 = sshll.u32 %s79_s0, 4  ;;  %s14_s10 = sshll.u32 %s62_s9, 4  ;;  %s13_s8 = int_to_ptr.hbm [resolvable:$true] %s12_s8  ;;  %s15_s10 = int_to_ptr.vmem [resolvable:$true] %s14_s10 }
   0x2   :  { %17 = dma.hbm_to_vmem [thread:$0]  %s13_s8, 256, %s15_s10, [#allocation3]  }
   0x3   :  { %60 = dma.done.wait [#allocation3], 256  }
   0x4   :  { %61 = vsyncadd [#allocation3], 4294967040  ;;  %v22_v0 = vld [vmem:[#allocation2] sm:$0xff]  ;;  %v23_v1 = vld [vmem:[#allocation2 + $0x8] sm:$0xff]  ;;  %vm28_vm0 = vcmask 7168  }
   0x5   :  { %v24_v2 = vadd.f32 %v23_v1, %v22_v0 }
   0x7   :  { %25 = vadd.xlane.f32.xlu0 %v24_v2 }
  0x7a   :  { %v26_v3 = vpop.xlane.xlu0 %25 }
  0x7b   :  { %v27_v4 = vmul.f32 0.00390625, %v26_v3 }
  0x7d   :  { %29 = vst.msk [vmem:[%s80_s1] sm:$0xff] %vm28_vm0, %v27_v4 }
  0x7e   :  { %34 = vsyncpa [#allocation3], 1 }

</bundles_post_ra>
